<compile_context>
chip_gen: v6e
topology: v6e:2x2x1
jax: 0.10.0
libtpu: 0.0.40
codegen_flags: <defaults>
</compile_context>

<pallas_src>
import jax
import jax.numpy as jnp
from jax import lax
from jax.experimental import pallas as pl
from jax.experimental.pallas import tpu as pltpu


def _round_up(x: int, m: int) -> int:
    return (x + m - 1) // m * m


def _vmem_capacity_bytes() -> int:
    try:
        return int(pltpu.get_tpu_info().vmem_capacity_bytes)
    except Exception:
        return 64 * 1024 * 1024  # conservative default: v7x per-TensorCore VMEM


# ---------------------------------------------------------------------------
# Path A (scalable default): scalar-prefetch DMA row gather.
# ---------------------------------------------------------------------------
def _gather_kernel(heads_ref, rels_ref, ent_row_ref, rel_row_ref,
                   head_out_ref, rel_out_ref):
    # heads_ref / rels_ref are the SMEM scalar-prefetch index arrays; the
    # data-dependent index_maps already selected the right table rows, so the
    # body is a pure VMEM copy of the fetched (1, D) rows.
    del heads_ref, rels_ref
    head_out_ref[...] = ent_row_ref[...]
    rel_out_ref[...] = rel_row_ref[...]


def _lookup_gather(entity_table, relation_table, heads, relations):
    B = heads.shape[0]
    v_ent, D = entity_table.shape
    v_rel = relation_table.shape[0]

    # Clamp so a bad index can never trigger an out-of-bounds DMA.
    # TODO(synk): torch.nn.Embedding raises on out-of-range indices; here they
    # are clamped to the last valid row instead.
    heads_i = jnp.clip(heads.astype(jnp.int32), 0, v_ent - 1)
    rels_i = jnp.clip(relations.astype(jnp.int32), 0, v_rel - 1)

    head_out, rel_out = pl.pallas_call(
        _gather_kernel,
        out_shape=(jax.ShapeDtypeStruct((B, D), entity_table.dtype),
                   jax.ShapeDtypeStruct((B, D), relation_table.dtype)),
        grid_spec=pltpu.PrefetchScalarGridSpec(
            num_scalar_prefetch=2,       # heads, relations -> SMEM
            grid=(B,),
            in_specs=[
                # Data-dependent row gather: index_map reads the SMEM prefetch
                # refs, so Pallas DMAs exactly table[heads[i]] per grid step.
                pl.BlockSpec((1, D), lambda i, heads, rels: (heads[i], 0)),
                pl.BlockSpec((1, D), lambda i, heads, rels: (rels[i], 0)),
            ],
            out_specs=[
                pl.BlockSpec((1, D), lambda i, heads, rels: (i, 0)),
                pl.BlockSpec((1, D), lambda i, heads, rels: (i, 0)),
            ],
        ),
        compiler_params=pltpu.CompilerParams(
            dimension_semantics=("arbitrary",),
            vmem_limit_bytes=8 * 1024 * 1024,   # a few (1, D) row buffers only
        ),
    )(heads_i, rels_i, entity_table, relation_table)
    return head_out, rel_out


# ---------------------------------------------------------------------------
# Path B (special case, very small vocab): VMEM-resident tables, one-hot @ MXU.
# One grid step gathers a whole batch tile, so the ~0.35us/step overhead of a
# per-row grid is avoided when V is tiny and both tables trivially fit VMEM.
# ---------------------------------------------------------------------------
def _onehot_kernel(heads_ref, rels_ref, ent_tab_ref, rel_tab_ref,
                   head_out_ref, rel_out_ref):
    heads = heads_ref[...]            # (tile_b, 1) int32
    rels = rels_ref[...]              # (tile_b, 1) int32
    ent_tab = ent_tab_ref[...]        # (V_ent, D) f32, VMEM-resident
    rel_tab = rel_tab_ref[...]        # (V_rel, D) f32, VMEM-resident

    tb = heads.shape[0]
    ent_onehot = (heads == lax.broadcasted_iota(
        jnp.int32, (tb, ent_tab.shape[0]), 1)).astype(ent_tab.dtype)
    rel_onehot = (rels == lax.broadcasted_iota(
        jnp.int32, (tb, rel_tab.shape[0]), 1)).astype(rel_tab.dtype)

    # precision=HIGHEST is required for exact f32 row extraction via the MXU;
    # do not lower it (DEFAULT would round the table through bf16).
    head_out_ref[...] = jnp.dot(
        ent_onehot, ent_tab,
        precision=lax.Precision.HIGHEST,
        preferred_element_type=jnp.float32).astype(head_out_ref.dtype)
    rel_out_ref[...] = jnp.dot(
        rel_onehot, rel_tab,
        precision=lax.Precision.HIGHEST,
        preferred_element_type=jnp.float32).astype(rel_out_ref.dtype)


def _lookup_onehot(entity_table, relation_table, heads, relations):
    B = heads.shape[0]
    v_ent, D = entity_table.shape
    v_rel = relation_table.shape[0]
    itemsize = jnp.dtype(entity_table.dtype).itemsize

    # Pad the batch only to the 8-row sublane granularity; partial last tiles
    # are handled by the pl.cdiv grid (no round-up to the full tile size).
    b_pad = _round_up(B, 8)
    tile_b = min(b_pad, 128)
    grid_b = pl.cdiv(b_pad, tile_b)

    # Indices stay as (tile_b, 1) VMEM tiles (not SMEM) because the one-hot
    # build needs a vector compare against a lane iota.  Out-of-range /
    # padded indices produce an all-zero one-hot row (zero embedding); padded
    # rows are sliced off below.
    heads_p = jnp.pad(heads.astype(jnp.int32), (0, b_pad - B)).reshape(b_pad, 1)
    rels_p = jnp.pad(relations.astype(jnp.int32), (0, b_pad - B)).reshape(b_pad, 1)

    # Explicit VMEM budget: double-buffered tables + index/output tiles.
    # (This path is only selected when the tables are tiny, so the second
    #  pipeline buffer on the constant table blocks is negligible waste.)
    vmem_needed = 2 * (v_ent + v_rel) * D * itemsize
    vmem_needed += 2 * 2 * tile_b * (4 + D * itemsize)
    vmem_limit = min(64 * 1024 * 1024, max(2 * vmem_needed, 4 * 1024 * 1024))

    head_out, rel_out = pl.pallas_call(
        _onehot_kernel,
        out_shape=(jax.ShapeDtypeStruct((b_pad, D), entity_table.dtype),
                   jax.ShapeDtypeStruct((b_pad, D), relation_table.dtype)),
        grid_spec=pltpu.PrefetchScalarGridSpec(
            num_scalar_prefetch=0,
            grid=(grid_b,),
            in_specs=[
                pl.BlockSpec((tile_b, 1), lambda i: (i, 0)),     # head ids
                pl.BlockSpec((tile_b, 1), lambda i: (i, 0)),     # relation ids
                pl.BlockSpec((v_ent, D), lambda i: (0, 0)),      # entity table (resident)
                pl.BlockSpec((v_rel, D), lambda i: (0, 0)),      # relation table (resident)
            ],
            out_specs=[
                pl.BlockSpec((tile_b, D), lambda i: (i, 0)),
                pl.BlockSpec((tile_b, D), lambda i: (i, 0)),
            ],
        ),
        compiler_params=pltpu.CompilerParams(
            # With grid=(1,) at small B this shards nothing across v7x's two
            # TensorCores; harmless on single-TC v5e/v6e.
            dimension_semantics=("parallel",),
            vmem_limit_bytes=vmem_limit,
        ),
    )(heads_p, rels_p, entity_table, relation_table)

    return head_out[:B], rel_out[:B]


# ---------------------------------------------------------------------------
# Dispatcher + module wrapper
# ---------------------------------------------------------------------------
def fused_embedding_lookup(entity_table, relation_table, heads, relations,
                           *, force_path=None):
    """Pallas equivalent of (nn.Embedding(ent)(heads), nn.Embedding(rel)(relations))."""
    v_ent, D = entity_table.shape
    v_rel = relation_table.shape[0]
    assert relation_table.shape[1] == D
    assert heads.ndim == 1 and relations.ndim == 1
    assert heads.shape[0] == relations.shape[0]

    if force_path is None:
        itemsize = jnp.dtype(entity_table.dtype).itemsize
        resident_bytes = 2 * (v_ent + v_rel) * D * itemsize  # double-buffered tables
        small_vocab = max(v_ent, v_rel) <= 1024
        fits_vmem = resident_bytes <= _vmem_capacity_bytes() // 4
        path = "onehot" if (small_vocab and fits_vmem) else "gather"
    else:
        path = force_path

    if path == "onehot":
        return _lookup_onehot(entity_table, relation_table, heads, relations)
    return _lookup_gather(entity_table, relation_table, heads, relations)


class EmbeddingGenerator:
    """JAX/Pallas port of the PyTorch EmbeddingGenerator module."""

    def __init__(self, num_entities, num_relations, embedding_dim, key):
        ke, kr = jax.random.split(key)
        # nn.Embedding default init: N(0, 1).  Tables are stored unpadded; no
        # per-call padding happens in the hot path.
        self.entity_embeddings = jax.random.normal(
            ke, (num_entities, embedding_dim), dtype=jnp.float32)
        self.relation_embeddings = jax.random.normal(
            kr, (num_relations, embedding_dim), dtype=jnp.float32)
        self._lookup = jax.jit(fused_embedding_lookup,
                               static_argnames=("force_path",))

    def __call__(self, heads, relations):
        return self._lookup(self.entity_embeddings, self.relation_embeddings,
                            heads, relations)


if __name__ == "__main__":
    key = jax.random.PRNGKey(0)
    k_params, k_heads, k_rels = jax.random.split(key, 3)

    num_entities = 16
    num_relations = 8
    embedding_dim = 50
    batch = 8

    model = EmbeddingGenerator(num_entities, num_relations, embedding_dim,
                               key=k_params)
    heads = jax.random.randint(k_heads, (batch,), 0, num_entities,
                               dtype=jnp.int32)
    relations = jax.random.randint(k_rels, (batch,), 0, num_relations,
                                   dtype=jnp.int32)

    # Plain-JAX reference.
    ref_head = jnp.take(model.entity_embeddings, heads, axis=0)
    ref_rel = jnp.take(model.relation_embeddings, relations, axis=0)

    # Default path (tiny vocab -> resident-table one-hot special case).
    head_emb, rel_emb = model(heads, relations)
    jax.block_until_ready((head_emb, rel_emb))
    assert head_emb.shape == (batch, embedding_dim)
    assert rel_emb.shape == (batch, embedding_dim)
    assert jnp.allclose(head_emb, ref_head, rtol=1e-6, atol=1e-6)
    assert jnp.allclose(rel_emb, ref_rel, rtol=1e-6, atol=1e-6)

    # Also exercise the scalable scalar-prefetch DMA-gather path.
    g_head, g_rel = fused_embedding_lookup(
        model.entity_embeddings, model.relation_embeddings, heads, relations,
        force_path="gather")
    jax.block_until_ready((g_head, g_rel))
    assert jnp.allclose(g_head, ref_head, rtol=0, atol=0)
    assert jnp.allclose(g_rel, ref_rel, rtol=0, atol=0)

    print("KERNEL_OK")
</pallas_src>

<mosaic_0001>
module attributes {stable_mosaic.version = 11 : i64} {
  func.func @_onehot_kernel(%arg0: i32, %arg1: memref<8x1xi32, #tpu.memory_space<vmem>>, %arg2: memref<8x1xi32, #tpu.memory_space<vmem>>, %arg3: memref<16x50xf32, #tpu.memory_space<vmem>>, %arg4: memref<8x50xf32, #tpu.memory_space<vmem>>, %arg5: memref<8x50xf32, #tpu.memory_space<vmem>>, %arg6: memref<8x50xf32, #tpu.memory_space<vmem>>) attributes {dimension_semantics = [#tpu.dimension_semantics<parallel>], iteration_bounds = array<i64: 1>, scalar_prefetch = 0 : i64, scratch_operands = 0 : i64, tpu.core_type = #tpu.core_type<tc>, window_params = [{transform_indices = @transform_0, window_bounds = array<i64: 8, 1>}, {transform_indices = @transform_1, window_bounds = array<i64: 8, 1>}, {pipeline_mode = #tpu.pipeline_mode<synchronous>, transform_indices = @transform_2, window_bounds = array<i64: 16, 50>}, {pipeline_mode = #tpu.pipeline_mode<synchronous>, transform_indices = @transform_3, window_bounds = array<i64: 8, 50>}, {transform_indices = @transform_4, window_bounds = array<i64: 8, 50>}, {transform_indices = @transform_5, window_bounds = array<i64: 8, 50>}]} {
    %c0 = arith.constant 0 : index
    %c0_0 = arith.constant 0 : index
    %0 = vector.load %arg1[%c0, %c0_0] : memref<8x1xi32, #tpu.memory_space<vmem>>, vector<8x1xi32>
    %c0_1 = arith.constant 0 : index
    %c0_2 = arith.constant 0 : index
    %1 = vector.load %arg2[%c0_1, %c0_2] : memref<8x1xi32, #tpu.memory_space<vmem>>, vector<8x1xi32>
    %c0_3 = arith.constant 0 : index
    %c0_4 = arith.constant 0 : index
    %2 = vector.load %arg3[%c0_3, %c0_4] : memref<16x50xf32, #tpu.memory_space<vmem>>, vector<16x50xf32>
    %c0_5 = arith.constant 0 : index
    %c0_6 = arith.constant 0 : index
    %3 = vector.load %arg4[%c0_5, %c0_6] : memref<8x50xf32, #tpu.memory_space<vmem>>, vector<8x50xf32>
    %4 = tpu.iota {dimensions = array<i32: 1>} : vector<8x16xi32>
    %5 = vector.broadcast %0 : vector<8x1xi32> to vector<8x16xi32>
    %6 = arith.cmpi eq, %5, %4 : vector<8x16xi32>
    %7 = arith.extui %6 : vector<8x16xi1> to vector<8x16xi32>
    %8 = arith.sitofp %7 : vector<8x16xi32> to vector<8x16xf32>
    %9 = tpu.iota {dimensions = array<i32: 1>} : vector<8x8xi32>
    %10 = vector.broadcast %1 : vector<8x1xi32> to vector<8x8xi32>
    %11 = arith.cmpi eq, %10, %9 : vector<8x8xi32>
    %12 = arith.extui %11 : vector<8x8xi1> to vector<8x8xi32>
    %13 = arith.sitofp %12 : vector<8x8xi32> to vector<8x8xf32>
    %cst = arith.constant dense<0.000000e+00> : vector<8x50xf32>
    %14 = tpu.matmul %8, %2, %cst {dimension_numbers = #tpu.dot_dimension_numbers<[1], [0], [0], [1], [0, 0, 1, 1], [], []>, precision = #tpu.contract_precision<fp32>} : vector<8x16xf32>, vector<16x50xf32>, vector<8x50xf32> -> vector<8x50xf32>
    %c0_7 = arith.constant 0 : index
    %c0_8 = arith.constant 0 : index
    %15 = vector.load %arg5[%c0_7, %c0_8] : memref<8x50xf32, #tpu.memory_space<vmem>>, vector<8x50xf32>
    tpu.vector_store %arg5[%c0_7, %c0_8], %14 {strides = array<i32>} : memref<8x50xf32, #tpu.memory_space<vmem>>, vector<8x50xf32>,
    %cst_9 = arith.constant dense<0.000000e+00> : vector<8x50xf32>
    %16 = tpu.matmul %13, %3, %cst_9 {dimension_numbers = #tpu.dot_dimension_numbers<[1], [0], [0], [1], [0, 0, 1, 1], [], []>, precision = #tpu.contract_precision<fp32>} : vector<8x8xf32>, vector<8x50xf32>, vector<8x50xf32> -> vector<8x50xf32>
    %c0_10 = arith.constant 0 : index
    %c0_11 = arith.constant 0 : index
    %17 = vector.load %arg6[%c0_10, %c0_11] : memref<8x50xf32, #tpu.memory_space<vmem>>, vector<8x50xf32>
    tpu.vector_store %arg6[%c0_10, %c0_11], %16 {strides = array<i32>} : memref<8x50xf32, #tpu.memory_space<vmem>>, vector<8x50xf32>,
    return
  }
  func.func @transform_0(%arg0: i32) -> (i32, i32) {
    %c0_i32 = arith.constant 0 : i32
    %c0_i32_0 = arith.constant 0 : i32
    return %arg0, %c0_i32 : i32, i32
  }
  func.func @transform_1(%arg0: i32) -> (i32, i32) {
    %c0_i32 = arith.constant 0 : i32
    %c0_i32_0 = arith.constant 0 : i32
    return %arg0, %c0_i32 : i32, i32
  }
  func.func @transform_2(%arg0: i32) -> (i32, i32) {
    %c0_i32 = arith.constant 0 : i32
    %c0_i32_0 = arith.constant 0 : i32
    %c0_i32_1 = arith.constant 0 : i32
    return %c0_i32, %c0_i32_0 : i32, i32
  }
  func.func @transform_3(%arg0: i32) -> (i32, i32) {
    %c0_i32 = arith.constant 0 : i32
    %c0_i32_0 = arith.constant 0 : i32
    %c0_i32_1 = arith.constant 0 : i32
    return %c0_i32, %c0_i32_0 : i32, i32
  }
  func.func @transform_4(%arg0: i32) -> (i32, i32) {
    %c0_i32 = arith.constant 0 : i32
    %c0_i32_0 = arith.constant 0 : i32
    return %arg0, %c0_i32 : i32, i32
  }
  func.func @transform_5(%arg0: i32) -> (i32, i32) {
    %c0_i32 = arith.constant 0 : i32
    %c0_i32_0 = arith.constant 0 : i32
    return %arg0, %c0_i32 : i32, i32
  }
}

</mosaic_0001>

<bundles_post_ra>
// kernel: fused_embedding_lookup.1
= control target key start
LH: loop header
LB: loop body
LE: loop exit
PB: predicated region body
PF: predicated region fallthrough
CT: control target
= control target key end

     0   :  { %11 = vsyncpa [#allocation3], 0  ;;  %s1306_s0 = inlined_call_operand.vmem [shape: s32[8,1], index: 0, kind: input, shape index: {}]   ;;  %s1307_s1 = inlined_call_operand.vmem [shape: s32[8,1], index: 1, kind: input, shape index: {}]   ;;  %s1308_s2 = inlined_call_operand.vmem [shape: f32[16,50], index: 2, kind: input, shape index: {}]   ;;  %s1309_s3 = inlined_call_operand.hbm [shape: f32[8,50], index: 3, kind: input, shape index: {}]   ;;  %s1310_s4 = inlined_call_operand.hbm [shape: f32[8,50], index: 4, kind: output, shape index: {0}]   ;;  %s1311_s5 = inlined_call_operand.hbm [shape: f32[8,50], index: 5, kind: output, shape index: {1}]  }
   0x1   :  { %12 = vsyncpa [#allocation4], 0 }
   0x2   :  { %13 = vsyncpa [#allocation7], 0  ;;  %s1180_s18 = smov [#allocation2]  }
   0x3   :  { %s26_s19 = sshll.u32 %s1180_s18, 4  ;;  %s27_s19 = int_to_ptr.vmem [resolvable:$true] %s26_s19 }
   0x4   :  { %s1122_s20 = scalar_lea.vmem %s27_s19, 128  ;;  %p1127_p1 = scmp.lt.s32.totalorder %s27_s19, %s27_s19 }
   0x5   :  { %p1123_p0 = scmp.ne.s32.totalorder %s27_s19, %s1122_s20  ;;  %p1128_p2 = scmp.lt.s32.totalorder %s1122_s20, %s1122_s20 }
   0x7   :  { %p1129_p3 = por %p1128_p2, %p1127_p1 }
   0x9   :  { %p1130_p4 = pnand %p1129_p3, %p1123_p0 }
   0xb   :  { %1133 = shalt.err (!%p1130_p4)
}
   0xc   :  { %29 = dma.hbm_to_vmem [thread:$0]  %s1309_s3, 128, %s27_s19, [#allocation3]  }
   0xd   :  { %1174 = dma.done.wait [#allocation3], 128  }
   0xe   :  { %1175 = vsyncadd [#allocation3], 4294967168  ;;  %v1181_v0 = vmov 0   ;;  %v1182_v1 = vmov 0.0   ;;  %vm1183_vm0 = vmmov 0   ;;  %v33_v2 = vld [vmem:[%s1306_s0] sm:$0xff]  ;;  %v38_v17 = vlaneseq }
   0xf   :  { %1113 = vset.pattern.permute.xlu0 %v1181_v0  ;;  %1042 = vmatprep.subr.mxu1 %v1182_v1  ;;  %v36_v3 = vld [vmem:[%s1308_s2 + $0x8] sm:$0xff]  ;;  %v35_v5 = vld [vmem:[%s1308_s2] sm:$0xff]  ;;  %vm52_vm1 = vcmask 130048   ;;  %vm517_vm4 = vcmask 64512   ;;  %s1184_s0 = smov [#allocation5]   ;;  %vm515_vm5 = vcmask 408576  }
  0x10   :  { %1035 = vmatprep.subr.mxu0 %v1182_v1  ;;  %1046 = vmatprep.mubr.msk.f32.mxu1 %vm1183_vm0, %v1182_v1  ;;  %v85_v4 = vand.u32 4294901760, %v36_v3  ;;  %v34_v6 = vld [vmem:[%s1307_s1] sm:$0xff]  ;;  %v88_v7 = vand.u32 4294901760, %v35_v5  ;;  %v39_v19 = vand.u32 127, %v38_v17  ;;  %s974_s1 = sshll.u32 %s1184_s0, 4  ;;  %s975_s1 = int_to_ptr.vmem [resolvable:$true] %s974_s1 }
  0x11   :  { %1039 = vmatprep.mubr.msk.f32.mxu0 %vm1183_vm0, %v1182_v1  ;;  %41 = vperm.xlu0 %1113, %v33_v2   ;;  %v37_v16 = vld [vmem:[#allocation2] sm:$0xff]  ;;  %s1134_s2 = scalar_lea.vmem %s975_s1, 128  ;;  %p1139_p6 = scmp.lt.s32.totalorder %s975_s1, %s975_s1 }
  0x12   :  { %v1237_v8 = vsub.f32 %v36_v3, %v85_v4  ;;  %1036 = vmatpush3.msra.mxu0 %v85_v4  ;;  %v1239_v9 = vsub.f32 %v35_v5, %v88_v7  ;;  %v552_v18 = vand.u32 4294901760, %v37_v16  ;;  %p1135_p5 = scmp.ne.s32.totalorder %s975_s1, %s1134_s2  ;;  %p1140_p7 = scmp.lt.s32.totalorder %s1134_s2, %s1134_s2 }
  0x13   :  { %1037 = vmatprep.subr.mxu0 %v1182_v1 }
  0x14   :  { %v164_v10 = vand.u32 4294901760, %v1237_v8  ;;  %1038 = vmatpush3.msra.mxu0 %v88_v7  ;;  %v171_v11 = vand.u32 4294901760, %v1239_v9  ;;  %v1249_v20 = vsub.f32 %v37_v16, %v552_v18  ;;  %p1141_p8 = por %p1140_p7, %p1139_p6 }
  0x15   :  { %47 = vperm.xlu0 %1113, %v34_v6   ;;  %1049 = vmatprep.subr.mxu0 %v1182_v1 }
  0x16   :  { %v165_v12 = vsub.f32 %v1237_v8, %v164_v10  ;;  %v172_v13 = vsub.f32 %v1239_v9, %v171_v11  ;;  %v630_v24 = vand.u32 4294901760, %v1249_v20  ;;  %p1142_p9 = pnand %p1141_p8, %p1135_p5 }
  0x18   :  { %v166_v14 = vand.u32 4294901760, %v165_v12  ;;  %v173_v15 = vand.u32 4294901760, %v172_v13  ;;  %v631_v29 = vsub.f32 %v1249_v20, %v630_v24 }
  0x1a   :  { %1043 = vmatpush3.msra.mxu1 %v166_v14  ;;  %v632_v33 = vand.u32 4294901760, %v631_v29 }
  0x1b   :  { %1044 = vmatprep.subr.mxu1 %v1182_v1 }
  0x1c   :  { %1045 = vmatpush3.msra.mxu1 %v173_v15 }
  0x1d   :  { %1056 = vmatprep.subr.mxu1 %v1182_v1 }
  0x8c   :  { %v42_v21 = vpop.permute.xlu0 %41 }
  0x8d   :  { %vm43_vm2 = vcmp.eq.s32.totalorder %v42_v21, %v39_v19 }
  0x8e   :  { %v997_v22 = vsel %vm43_vm2, 1.0, %v1182_v1 }
  0x8f   :  { %v54_v23 = vsel %vm52_vm1, %v997_v22, 0  ;;  %1047 = vmatmul.mubr.msk.f32.vlgmr.msra.gmra.mxu1 %vm52_vm1, %v997_v22 }
  0x90   :  { %v124_v25 = vsub.f32 %v54_v23, %v54_v23  ;;  %v48_v26 = vpop.permute.xlu0 %47  ;;  %1057 = vmatpush3.msra.mxu1 %v85_v4  ;;  %1060 = vmatprep.mubr.msk.f32.mxu1 %vm1183_vm0, %v1182_v1 }
  0x91   :  { %vm49_vm3 = vcmp.eq.s32.totalorder %v48_v26, %v39_v19  ;;  %1058 = vmatprep.subr.mxu1 %v1182_v1 }
  0x92   :  { %v998_v27 = vsel %vm49_vm3, 1.0, %v1182_v1  ;;  %1059 = vmatpush3.msra.mxu1 %v88_v7  ;;  %v125_v28 = vand.u32 4294901760, %v124_v25 }
  0x93   :  { %1070 = vmatprep.subr.mxu1 %v1182_v1  ;;  %v519_v31 = vsel %vm517_vm4, %v998_v27, 0 }
  0x94   :  { %1061 = vmatmul.mubr.f32.vlgmr.msra.gmra.mxu1 %v125_v28  ;;  %v126_v30 = vsub.f32 %v124_v25, %v125_v28  ;;  %v588_v34 = vsub.f32 %v519_v31, %v519_v31 }
  0x95   :  { %1071 = vmatpush3.msra.mxu1 %v85_v4  ;;  %1074 = vmatprep.mubr.msk.f32.mxu1 %vm1183_vm0, %v1182_v1 }
  0x96   :  { %1072 = vmatprep.subr.mxu1 %v1182_v1  ;;  %v127_v32 = vand.u32 4294901760, %v126_v30  ;;  %v589_v35 = vand.u32 4294901760, %v588_v34 }
  0x97   :  { %1073 = vmatpush3.msra.mxu1 %v88_v7 }
  0x98   :  { %1040 = vmatmul.mubr.f32.vlgmr.msra.gmra.mxu0 %v127_v32  ;;  %1075 = vmatmul.mubr.msk.f32.vlgmr.msra.gmra.mxu1 %vm52_vm1, %v997_v22  ;;  %v590_v36 = vsub.f32 %v588_v34, %v589_v35 }
  0x99   :  { %1050 = vmatpush3.msra.mxu0 %v1237_v8  ;;  %1082 = vmatprep.subr.mxu1 %v1182_v1 }
  0x9a   :  { %1051 = vmatprep.subr.mxu0 %v1182_v1  ;;  %1053 = vmatprep.mubr.msk.f32.mxu0 %vm1183_vm0, %v1182_v1  ;;  %v591_v37 = vand.u32 4294901760, %v590_v36 }
  0x9b   :  { %1052 = vmatpush3.msra.mxu0 %v1239_v9  ;;  %1083 = vmatpush3.msra.mxu1 %v632_v33 }
  0x9c   :  { %1063 = vmatprep.subr.mxu0 %v1182_v1  ;;  %1084 = vmatprep.mubr.msk.f32.mxu1 %vm1183_vm0, %v1182_v1 }
  0x9d   :  { %1054 = vmatmul.mubr.f32.vlgmr.msra.gmra.mxu0 %v124_v25  ;;  %1085 = vmatmul.mubr.msk.f32.vlgmr.msra.gmra.mxu1 %vm517_vm4, %v998_v27 }
  0x9e   :  { %1064 = vmatpush3.msra.mxu0 %v164_v10  ;;  %1092 = vmatprep.subr.mxu1 %v1182_v1 }
  0x9f   :  { %1065 = vmatprep.subr.mxu0 %v1182_v1  ;;  %1067 = vmatprep.mubr.msk.f32.mxu0 %vm1183_vm0, %v1182_v1 }
  0xa0   :  { %1066 = vmatpush3.msra.mxu0 %v171_v11  ;;  %1093 = vmatpush3.msra.mxu1 %v552_v18 }
  0xa1   :  { %1077 = vmatprep.subr.mxu0 %v1182_v1  ;;  %1094 = vmatprep.mubr.msk.f32.mxu1 %vm1183_vm0, %v1182_v1 }
  0xa2   :  { %1068 = vmatmul.mubr.msk.f32.vlgmr.msra.gmra.mxu0 %vm52_vm1, %v997_v22  ;;  %1095 = vmatmul.mubr.f32.vlgmr.msra.gmra.mxu1 %v589_v35 }
  0xa3   :  { %1078 = vmatpush3.msra.mxu0 %v552_v18  ;;  %1102 = vmatprep.subr.mxu1 %v1182_v1 }
  0xa4   :  { %1079 = vmatprep.mubr.msk.f32.mxu0 %vm1183_vm0, %v1182_v1  ;;  %1087 = vmatprep.subr.mxu0 %v1182_v1 }
  0xa5   :  { %1103 = vmatpush3.msra.mxu1 %v552_v18  ;;  %1104 = vmatprep.mubr.msk.f32.mxu1 %vm1183_vm0, %v1182_v1 }
  0xa6   :  { %1080 = vmatmul.mubr.f32.vlgmr.msra.gmra.mxu0 %v591_v37  ;;  %1105 = vmatmul.mubr.msk.f32.vlgmr.msra.gmra.mxu1 %vm517_vm4, %v998_v27 }
  0xa7   :  { %1088 = vmatpush3.msra.mxu0 %v1249_v20  ;;  %1089 = vmatprep.mubr.msk.f32.mxu0 %vm1183_vm0, %v1182_v1 }
  0xa8   :  { %1097 = vmatprep.subr.mxu0 %v1182_v1 }
  0xaa   :  { %1090 = vmatmul.mubr.f32.vlgmr.msra.gmra.mxu0 %v588_v34 }
  0xab   :  { %1098 = vmatpush3.msra.mxu0 %v630_v24  ;;  %1099 = vmatprep.mubr.msk.f32.mxu0 %vm1183_vm0, %v1182_v1 }
  0xae   :  { %1100 = vmatmul.mubr.msk.f32.vlgmr.msra.gmra.mxu0 %vm517_vm4, %v998_v27 }
 0x14f   :  { %v210_v38 = vpop.f32.mrf.mxu1 }
 0x151   :  { %v1048_v39 = vpop.f32.mrf.mxu1 }
 0x154   :  { %v361_v40 = vpop.f32.mrf.mxu1 }
 0x156   :  { %v1062_v41 = vpop.f32.mrf.mxu1 }
 0x158   :  { %v129_v42 = vpop.f32.mrf.mxu0  ;;  %v511_v43 = vpop.f32.mrf.mxu1 }
 0x159   :  { %v211_v46 = vadd.f32 %v210_v38, %v129_v42 }
 0x15a   :  { %v1041_v44 = vpop.f32.mrf.mxu0  ;;  %v1076_v45 = vpop.f32.mrf.mxu1 }
 0x15d   :  { %v286_v47 = vpop.f32.mrf.mxu0  ;;  %v669_v48 = vpop.f32.mrf.mxu1 }
 0x15e   :  { %v287_v49 = vadd.f32 %v286_v47, %v211_v46 }
 0x15f   :  { %v1055_v50 = vpop.f32.mrf.mxu0  ;;  %v1086_v51 = vpop.f32.mrf.mxu1 }
 0x160   :  { %v362_v52 = vadd.f32 %v361_v40, %v287_v49 }
 0x162   :  { %v438_v53 = vpop.f32.mrf.mxu0  ;;  %v817_v54 = vpop.f32.mrf.mxu1 }
 0x163   :  { %v439_v55 = vadd.f32 %v438_v53, %v362_v52 }
 0x164   :  { %v1069_v56 = vpop.f32.mrf.mxu0  ;;  %v1096_v57 = vpop.f32.mrf.mxu1 }
 0x165   :  { %v512_v58 = vadd.f32 %v511_v43, %v439_v55 }
 0x166   :  { %v593_v59 = vpop.f32.mrf.mxu0  ;;  %v963_v60 = vpop.f32.mrf.mxu1 }
 0x167   :  { %516 = vst.msk [vmem:[#allocation5] sm:$0xff] %vm515_vm5, %v512_v58 }
 0x168   :  { %v1081_v61 = vpop.f32.mrf.mxu0  ;;  %v1106_v62 = vpop.f32.mrf.mxu1 }
 0x169   :  { %1145 = shalt.err (!%p1142_p9)
}
 0x16a   :  { %977 = dma.vmem_to_hbm [thread:$0]  %s975_s1, 128, %s1310_s4, [#allocation4]   ;;  %v670_v63 = vadd.f32 %v669_v48, %v593_v59  ;;  %v743_v0 = vpop.f32.mrf.mxu0 }
 0x16b   :  { %s1185_s7 = smov [#allocation6]  }
 0x16c   :  { %v744_v1 = vadd.f32 %v743_v0, %v670_v63  ;;  %v1091_v2 = vpop.f32.mrf.mxu0  ;;  %s984_s8 = sshll.u32 %s1185_s7, 4  ;;  %s985_s8 = int_to_ptr.vmem [resolvable:$true] %s984_s8 }
 0x16d   :  { %s1154_s9 = scalar_lea.vmem %s985_s8, 128  ;;  %p1159_p11 = scmp.lt.s32.totalorder %s985_s8, %s985_s8 }
 0x16e   :  { %v818_v3 = vadd.f32 %v817_v54, %v744_v1  ;;  %v891_v4 = vpop.f32.mrf.mxu0  ;;  %p1155_p10 = scmp.ne.s32.totalorder %s985_s8, %s1154_s9  ;;  %p1160_p12 = scmp.lt.s32.totalorder %s1154_s9, %s1154_s9 }
 0x170   :  { %v892_v5 = vadd.f32 %v891_v4, %v818_v3  ;;  %v1101_v6 = vpop.f32.mrf.mxu0  ;;  %p1161_p13 = por %p1160_p12, %p1159_p11 }
 0x172   :  { %v964_v7 = vadd.f32 %v963_v60, %v892_v5  ;;  %p1162_p0 = pnand %p1161_p13, %p1155_p10 }
 0x174   :  { %967 = vst.msk [vmem:[#allocation6] sm:$0xff] %vm515_vm5, %v964_v7 }
 0x175   :  { %1165 = shalt.err (!%p1162_p0)
}
 0x176   :  { %987 = dma.vmem_to_hbm [thread:$0]  %s985_s8, 128, %s1311_s5, [#allocation7]  }
 0x177   :  { %1176 = dma.done.wait [#allocation4], 128  }
 0x178   :  { %1177 = vsyncadd [#allocation4], 4294967168 }
 0x179   :  { %1178 = dma.done.wait [#allocation7], 128  }
 0x17a   :  { %1179 = vsyncadd [#allocation7], 4294967168 }
 0x17b   :  { %994 = vsyncpa [#allocation3], 1 }
 0x17c   :  { %995 = vsyncpa [#allocation4], 1 }
 0x17d   :  { %996 = vsyncpa [#allocation7], 1 }

</bundles_post_ra>
